<compile_context>
chip_gen: v6e
topology: v6e:2x2x1
jax: 0.10.0
libtpu: 0.0.40
codegen_flags: <defaults>
</compile_context>

<pallas_src>
import functools

import jax
import jax.numpy as jnp
from jax.experimental import pallas as pl
from jax.experimental.pallas import tpu as pltpu


# -------------------- Pallas kernel: fused conv taps + Gauss + relu^alpha --------------------

def _reverse_mask_kernel(xa_ref, xb_ref, w_ref, activ_ref, update_ref, *,
                         tap_offsets, a, mu, sigma1, sigma2, alpha):
    """One (batch, position-tile) grid step.

    xa_ref, xb_ref: (1, K4, TP) bf16 -- two *consecutive* flat-position blocks of the
        space-to-depth input (the second block provides the overlap the taps need).
    w_ref:          (ntaps, Cout, K4) bf16 -- one (Cout, K4) weight slab per tap.
    activ_ref, update_ref: (1, Cout, TP) f32 output tiles (lane axis = flat positions).
    """
    xs = jnp.concatenate([xa_ref[0], xb_ref[0]], axis=-1)          # (K4, 2*TP)
    k4, tp2 = xs.shape
    tp = tp2 // 2
    w_all = w_ref[...]                                             # (ntaps, Cout, K4)

    # Convolution as `ntaps` MXU matmuls; each tap is a static lane shift of the input.
    feat = jnp.zeros((w_all.shape[1], tp), dtype=jnp.float32)
    for k, off in enumerate(tap_offsets):
        rhs = xs[:, off:off + tp]                                  # (K4, TP), static slice
        feat = feat + jnp.dot(w_all[k], rhs, preferred_element_type=jnp.float32)

    # GaussActivation (parameters are the module's clamped constants).
    d = feat - mu
    d2 = d * d
    if sigma1 == sigma2:            # module default: share one exp between both branches
        g = jnp.exp(-sigma1 * d2)
        left = a * g
        right = 1.0 + (a - 1.0) * g
    else:
        left = a * jnp.exp(-sigma1 * d2)
        right = 1.0 + (a - 1.0) * jnp.exp(-sigma2 * d2)
    activ_ref[0, :, :] = jnp.where(feat < mu, left, right)

    # MaskUpdate: relu(feat) ** alpha, as masked exp(alpha*log(.)) -- robust at feat <= 0.
    pos = feat > 0.0
    safe = jnp.where(pos, feat, 1.0)
    update_ref[0, :, :] = jnp.where(pos, jnp.exp(alpha * jnp.log(safe)), 0.0)


# -------------------- wrapper --------------------

def reverse_mask_conv(x_nchw, weight, *, stride=2, padding=1,
                      a=1.1, mu=1.0, sigma1=0.5, sigma2=0.5, alpha=0.8,
                      max_tile=2048):
    """x_nchw: (N, Cin, H, W); weight: (Cout, Cin, kh, kw).
    Returns (maskActiv, maskUpdate), both (N, Cout, Hout, Wout) float32 (NCHW)."""
    N, Cin, H, W = x_nchw.shape
    Cout, Cin_w, kh, kw = weight.shape
    assert Cin == Cin_w
    assert stride == 2 and kh % 2 == 0 and kw % 2 == 0, \
        "fused space-to-depth path is specialized to the module's stride-2, even kernel"

    Hout = (H + 2 * padding - kh) // stride + 1
    Wout = (W + 2 * padding - kw) // stride + 1
    khh, kwh = kh // 2, kw // 2
    ntaps = khh * kwh
    K4 = 4 * Cin

    # --- pad spatially (to even dims) then 2x2 space-to-depth, flattened over (h', w') ---
    Hpad, Wpad = H + 2 * padding, W + 2 * padding
    Hpe, Wpe = Hpad + (Hpad % 2), Wpad + (Wpad % 2)
    x_pad = jnp.pad(x_nchw, ((0, 0), (0, 0),
                             (padding, padding + (Hpe - Hpad)),
                             (padding, padding + (Wpe - Wpad))))
    Hp2, Wp2 = Hpe // 2, Wpe // 2
    xs2d = x_pad.reshape(N, Cin, Hp2, 2, Wp2, 2)
    xs2d = jnp.transpose(xs2d, (0, 3, 5, 1, 2, 4)).reshape(N, K4, Hp2 * Wp2)

    # weight (Cout,Cin,kh,kw) -> (ntaps, Cout, K4); tap k=(ih,jw), channel c'=(ph,pw,ci)
    w_r = weight.reshape(Cout, Cin, khh, 2, kwh, 2)
    w_r = jnp.transpose(w_r, (2, 4, 0, 3, 5, 1)).reshape(ntaps, Cout, K4)
    tap_offsets = tuple(ih * Wp2 + jw for ih in range(khh) for jw in range(kwh))

    # --- flat-position tiling: TP lanes per tile (multiple of 128), TP >= max tap offset ---
    P_real = Hout * Wp2               # valid rows x padded row width (extra column dropped later)
    TP = 128 * pl.cdiv(min(P_real, max_tile), 128)
    TP = max(TP, 128 * pl.cdiv(tap_offsets[-1] + 1, 128))
    T = pl.cdiv(P_real, TP)
    P_pad = T * TP
    L_in = (T + 1) * TP               # one extra block so tile t can also fetch block t+1

    cur = Hp2 * Wp2
    if L_in > cur:
        xs2d = jnp.pad(xs2d, ((0, 0), (0, 0), (0, L_in - cur)))
    elif L_in < cur:
        xs2d = xs2d[:, :, :L_in]      # tail only feeds discarded positions
    x_flat = xs2d.astype(jnp.bfloat16)
    w_r = w_r.astype(jnp.bfloat16)

    kernel = functools.partial(_reverse_mask_kernel, tap_offsets=tap_offsets,
                               a=a, mu=mu, sigma1=sigma1, sigma2=sigma2, alpha=alpha)

    activ_flat, update_flat = pl.pallas_call(
        kernel,
        out_shape=(jax.ShapeDtypeStruct((N, Cout, P_pad), jnp.float32),
                   jax.ShapeDtypeStruct((N, Cout, P_pad), jnp.float32)),
        grid=(N, T),
        in_specs=[
            pl.BlockSpec((1, K4, TP), lambda n, t: (n, 0, t)),       # current position block
            pl.BlockSpec((1, K4, TP), lambda n, t: (n, 0, t + 1)),   # next block (tap overlap)
            pl.BlockSpec((ntaps, Cout, K4), lambda n, t: (0, 0, 0)), # weights (resident)
        ],
        out_specs=(
            pl.BlockSpec((1, Cout, TP), lambda n, t: (n, 0, t)),
            pl.BlockSpec((1, Cout, TP), lambda n, t: (n, 0, t)),
        ),
        compiler_params=pltpu.CompilerParams(
            dimension_semantics=("parallel", "parallel")),
    )(x_flat, x_flat, w_r)

    # drop tile padding and the extra (Wp2 -> Wout) column; result is already NCHW
    activ = activ_flat[:, :, :P_real].reshape(N, Cout, Hout, Wp2)[:, :, :, :Wout]
    update = update_flat[:, :, :P_real].reshape(N, Cout, Hout, Wp2)[:, :, :, :Wout]
    return activ, update


# -------------------- demo / self-check --------------------

if __name__ == "__main__":
    key = jax.random.PRNGKey(0)
    k_x, k_w = jax.random.split(key)

    # Small shapes consistent with the module: batch=2, Cin=4, Cout=8, spatial=16.
    N, Cin, Cout, H, W = 2, 4, 8, 16, 16
    kh = kw = 4

    # inputMasks in [0, 1] like a mask; weights ~ N(0, 0.02) (weights_init gaussian).
    x = jax.random.uniform(k_x, (N, Cin, H, W), dtype=jnp.float32)
    weight = 0.02 * jax.random.normal(k_w, (Cout, Cin, kh, kw), dtype=jnp.float32)

    activ, update = jax.jit(reverse_mask_conv)(x, weight)
    activ = jax.block_until_ready(activ)
    update = jax.block_until_ready(update)

    # Reference in plain JAX, on the same bf16-rounded inputs the kernel feeds the MXU.
    xb = x.astype(jnp.bfloat16).astype(jnp.float32)
    wb = weight.astype(jnp.bfloat16).astype(jnp.float32)
    feat_ref = jax.lax.conv_general_dilated(
        xb, wb, window_strides=(2, 2), padding=((1, 1), (1, 1)),
        dimension_numbers=("NCHW", "OIHW", "NCHW"),
        precision=jax.lax.Precision.HIGHEST)
    a_, mu_, s_, alpha_ = 1.1, 1.0, 0.5, 0.8
    d2 = (feat_ref - mu_) ** 2
    activ_ref = jnp.where(feat_ref < mu_, a_ * jnp.exp(-s_ * d2),
                          1.0 + (a_ - 1.0) * jnp.exp(-s_ * d2))
    update_ref = jnp.power(jnp.maximum(feat_ref, 0.0), alpha_)

    assert activ.shape == (N, Cout, H // 2, W // 2)
    assert update.shape == (N, Cout, H // 2, W // 2)
    assert jnp.allclose(activ, activ_ref, rtol=1e-3, atol=1e-3), \
        float(jnp.max(jnp.abs(activ - activ_ref)))
    assert jnp.allclose(update, update_ref, rtol=1e-3, atol=1e-3), \
        float(jnp.max(jnp.abs(update - update_ref)))

    print("KERNEL_OK")
</pallas_src>

<mosaic_0001>
module attributes {stable_mosaic.version = 11 : i64} {
  func.func @_reverse_mask_kernel(%arg0: i32, %arg1: i32, %arg2: memref<1x16x128xbf16, #tpu.memory_space<vmem>>, %arg3: memref<1x16x128xbf16, #tpu.memory_space<vmem>>, %arg4: memref<4x8x16xbf16, #tpu.memory_space<vmem>>, %arg5: memref<1x8x128xf32, #tpu.memory_space<vmem>>, %arg6: memref<1x8x128xf32, #tpu.memory_space<vmem>>) attributes {dimension_semantics = [#tpu.dimension_semantics<parallel>, #tpu.dimension_semantics<parallel>], iteration_bounds = array<i64: 2, 1>, scalar_prefetch = 0 : i64, scratch_operands = 0 : i64, tpu.core_type = #tpu.core_type<tc>, window_params = [{transform_indices = @transform_0, window_bounds = array<i64: 1, 16, 128>}, {transform_indices = @transform_1, window_bounds = array<i64: 1, 16, 128>}, {pipeline_mode = #tpu.pipeline_mode<synchronous>, transform_indices = @transform_2, window_bounds = array<i64: 4, 8, 16>}, {transform_indices = @transform_3, window_bounds = array<i64: 1, 8, 128>}, {transform_indices = @transform_4, window_bounds = array<i64: 1, 8, 128>}]} {
    %c0 = arith.constant 0 : index
    %c0_0 = arith.constant 0 : index
    %c0_1 = arith.constant 0 : index
    %0 = vector.load %arg2[%c0, %c0_0, %c0_1] : memref<1x16x128xbf16, #tpu.memory_space<vmem>>, vector<1x16x128xbf16>
    %1 = vector.shape_cast %0 : vector<1x16x128xbf16> to vector<16x128xbf16>
    %c0_2 = arith.constant 0 : index
    %c0_3 = arith.constant 0 : index
    %c0_4 = arith.constant 0 : index
    %2 = vector.load %arg3[%c0_2, %c0_3, %c0_4] : memref<1x16x128xbf16, #tpu.memory_space<vmem>>, vector<1x16x128xbf16>
    %3 = vector.shape_cast %2 : vector<1x16x128xbf16> to vector<16x128xbf16>
    %4 = tpu.concatenate %1, %3 in 1 : vector<16x128xbf16>, vector<16x128xbf16> -> vector<16x256xbf16>
    %c0_5 = arith.constant 0 : index
    %c0_6 = arith.constant 0 : index
    %c0_7 = arith.constant 0 : index
    %5 = vector.load %arg4[%c0_5, %c0_6, %c0_7] : memref<4x8x16xbf16, #tpu.memory_space<vmem>>, vector<4x8x16xbf16>
    %cst = arith.constant 0.000000e+00 : f32
    %6 = vector.broadcast %cst : f32 to vector<8x128xf32>
    %7 = vector.extract_strided_slice %4 {offsets = [0, 0], sizes = [16, 128], strides = [1, 1]} : vector<16x256xbf16> to vector<16x128xbf16>
    %8 = vector.extract_strided_slice %5 {offsets = [0, 0, 0], sizes = [1, 8, 16], strides = [1, 1, 1]} : vector<4x8x16xbf16> to vector<1x8x16xbf16>
    %9 = vector.shape_cast %8 : vector<1x8x16xbf16> to vector<8x16xbf16>
    %cst_8 = arith.constant dense<0.000000e+00> : vector<8x128xf32>
    %10 = tpu.matmul %9, %7, %cst_8 {dimension_numbers = #tpu.dot_dimension_numbers<[1], [0], [0], [1], [0, 0, 1, 1], [], []>} : vector<8x16xbf16>, vector<16x128xbf16>, vector<8x128xf32> -> vector<8x128xf32>
    %11 = arith.addf %6, %10 : vector<8x128xf32>
    %12 = vector.extract_strided_slice %4 {offsets = [0, 1], sizes = [16, 128], strides = [1, 1]} : vector<16x256xbf16> to vector<16x128xbf16>
    %13 = vector.extract_strided_slice %5 {offsets = [1, 0, 0], sizes = [1, 8, 16], strides = [1, 1, 1]} : vector<4x8x16xbf16> to vector<1x8x16xbf16>
    %14 = vector.shape_cast %13 : vector<1x8x16xbf16> to vector<8x16xbf16>
    %cst_9 = arith.constant dense<0.000000e+00> : vector<8x128xf32>
    %15 = tpu.matmul %14, %12, %cst_9 {dimension_numbers = #tpu.dot_dimension_numbers<[1], [0], [0], [1], [0, 0, 1, 1], [], []>} : vector<8x16xbf16>, vector<16x128xbf16>, vector<8x128xf32> -> vector<8x128xf32>
    %16 = arith.addf %11, %15 : vector<8x128xf32>
    %17 = vector.extract_strided_slice %4 {offsets = [0, 9], sizes = [16, 128], strides = [1, 1]} : vector<16x256xbf16> to vector<16x128xbf16>
    %18 = vector.extract_strided_slice %5 {offsets = [2, 0, 0], sizes = [1, 8, 16], strides = [1, 1, 1]} : vector<4x8x16xbf16> to vector<1x8x16xbf16>
    %19 = vector.shape_cast %18 : vector<1x8x16xbf16> to vector<8x16xbf16>
    %cst_10 = arith.constant dense<0.000000e+00> : vector<8x128xf32>
    %20 = tpu.matmul %19, %17, %cst_10 {dimension_numbers = #tpu.dot_dimension_numbers<[1], [0], [0], [1], [0, 0, 1, 1], [], []>} : vector<8x16xbf16>, vector<16x128xbf16>, vector<8x128xf32> -> vector<8x128xf32>
    %21 = arith.addf %16, %20 : vector<8x128xf32>
    %22 = vector.extract_strided_slice %4 {offsets = [0, 10], sizes = [16, 128], strides = [1, 1]} : vector<16x256xbf16> to vector<16x128xbf16>
    %23 = vector.extract_strided_slice %5 {offsets = [3, 0, 0], sizes = [1, 8, 16], strides = [1, 1, 1]} : vector<4x8x16xbf16> to vector<1x8x16xbf16>
    %24 = vector.shape_cast %23 : vector<1x8x16xbf16> to vector<8x16xbf16>
    %cst_11 = arith.constant dense<0.000000e+00> : vector<8x128xf32>
    %25 = tpu.matmul %24, %22, %cst_11 {dimension_numbers = #tpu.dot_dimension_numbers<[1], [0], [0], [1], [0, 0, 1, 1], [], []>} : vector<8x16xbf16>, vector<16x128xbf16>, vector<8x128xf32> -> vector<8x128xf32>
    %26 = arith.addf %21, %25 : vector<8x128xf32>
    %cst_12 = arith.constant 1.000000e+00 : f32
    %27 = vector.broadcast %cst_12 : f32 to vector<8x128xf32>
    %28 = arith.subf %26, %27 : vector<8x128xf32>
    %29 = arith.mulf %28, %28 : vector<8x128xf32>
    %cst_13 = arith.constant -5.000000e-01 : f32
    %30 = vector.broadcast %cst_13 : f32 to vector<8x128xf32>
    %31 = arith.mulf %30, %29 : vector<8x128xf32>
    %32 = math.exp %31 : vector<8x128xf32>
    %cst_14 = arith.constant 1.100000e+00 : f32
    %33 = vector.broadcast %cst_14 : f32 to vector<8x128xf32>
    %34 = arith.mulf %33, %32 : vector<8x128xf32>
    %cst_15 = arith.constant 1.000000e-01 : f32
    %35 = vector.broadcast %cst_15 : f32 to vector<8x128xf32>
    %36 = arith.mulf %35, %32 : vector<8x128xf32>
    %cst_16 = arith.constant 1.000000e+00 : f32
    %37 = vector.broadcast %cst_16 : f32 to vector<8x128xf32>
    %38 = arith.addf %37, %36 : vector<8x128xf32>
    %cst_17 = arith.constant 1.000000e+00 : f32
    %39 = vector.broadcast %cst_17 : f32 to vector<8x128xf32>
    %40 = arith.cmpf olt, %26, %39 : vector<8x128xf32>
    %41 = arith.select %40, %34, %38 : vector<8x128xi1>, vector<8x128xf32>
    %c0_18 = arith.constant 0 : index
    %c0_19 = arith.constant 0 : index
    %c0_20 = arith.constant 0 : index
    %42 = vector.load %arg5[%c0_18, %c0_19, %c0_20] : memref<1x8x128xf32, #tpu.memory_space<vmem>>, vector<1x8x128xf32>
    %43 = vector.shape_cast %42 : vector<1x8x128xf32> to vector<8x128xf32>
    %44 = vector.shape_cast %41 : vector<8x128xf32> to vector<1x8x128xf32>
    tpu.vector_store %arg5[%c0_18, %c0_19, %c0_20], %44 {strides = array<i32>} : memref<1x8x128xf32, #tpu.memory_space<vmem>>, vector<1x8x128xf32>,
    %cst_21 = arith.constant 0.000000e+00 : f32
    %45 = vector.broadcast %cst_21 : f32 to vector<8x128xf32>
    %46 = arith.cmpf ogt, %26, %45 : vector<8x128xf32>
    %cst_22 = arith.constant 1.000000e+00 : f32
    %47 = vector.broadcast %cst_22 : f32 to vector<8x128xf32>
    %48 = arith.select %46, %26, %47 : vector<8x128xi1>, vector<8x128xf32>
    %49 = math.log %48 : vector<8x128xf32>
    %cst_23 = arith.constant 8.000000e-01 : f32
    %50 = vector.broadcast %cst_23 : f32 to vector<8x128xf32>
    %51 = arith.mulf %50, %49 : vector<8x128xf32>
    %52 = math.exp %51 : vector<8x128xf32>
    %cst_24 = arith.constant 0.000000e+00 : f32
    %53 = vector.broadcast %cst_24 : f32 to vector<8x128xf32>
    %54 = arith.select %46, %52, %53 : vector<8x128xi1>, vector<8x128xf32>
    %c0_25 = arith.constant 0 : index
    %c0_26 = arith.constant 0 : index
    %c0_27 = arith.constant 0 : index
    %55 = vector.load %arg6[%c0_25, %c0_26, %c0_27] : memref<1x8x128xf32, #tpu.memory_space<vmem>>, vector<1x8x128xf32>
    %56 = vector.shape_cast %55 : vector<1x8x128xf32> to vector<8x128xf32>
    %57 = vector.shape_cast %54 : vector<8x128xf32> to vector<1x8x128xf32>
    tpu.vector_store %arg6[%c0_25, %c0_26, %c0_27], %57 {strides = array<i32>} : memref<1x8x128xf32, #tpu.memory_space<vmem>>, vector<1x8x128xf32>,
    return
  }
  func.func @transform_0(%arg0: i32, %arg1: i32) -> (i32, i32, i32) {
    %c0_i32 = arith.constant 0 : i32
    %c0_i32_0 = arith.constant 0 : i32
    return %arg0, %c0_i32, %arg1 : i32, i32, i32
  }
  func.func @transform_1(%arg0: i32, %arg1: i32) -> (i32, i32, i32) {
    %c1_i32 = arith.constant 1 : i32
    %0 = arith.addi %arg1, %c1_i32 : i32
    %c0_i32 = arith.constant 0 : i32
    %c0_i32_0 = arith.constant 0 : i32
    return %arg0, %c0_i32, %0 : i32, i32, i32
  }
  func.func @transform_2(%arg0: i32, %arg1: i32) -> (i32, i32, i32) {
    %c0_i32 = arith.constant 0 : i32
    %c0_i32_0 = arith.constant 0 : i32
    %c0_i32_1 = arith.constant 0 : i32
    %c0_i32_2 = arith.constant 0 : i32
    return %c0_i32, %c0_i32_0, %c0_i32_1 : i32, i32, i32
  }
  func.func @transform_3(%arg0: i32, %arg1: i32) -> (i32, i32, i32) {
    %c0_i32 = arith.constant 0 : i32
    %c0_i32_0 = arith.constant 0 : i32
    return %arg0, %c0_i32, %arg1 : i32, i32, i32
  }
  func.func @transform_4(%arg0: i32, %arg1: i32) -> (i32, i32, i32) {
    %c0_i32 = arith.constant 0 : i32
    %c0_i32_0 = arith.constant 0 : i32
    return %arg0, %c0_i32, %arg1 : i32, i32, i32
  }
}

</mosaic_0001>

<bundles_post_ra>
// kernel: reverse_mask_conv.1
= control target key start
LH: loop header
LB: loop body
LE: loop exit
PB: predicated region body
PF: predicated region fallthrough
CT: control target
= control target key end

     0   :  { %s921_s15 = smov 0   ;;  %s923_s16 = smov 0   ;;  %s1025_s0 = inlined_call_operand.vmem [shape: bf16[2,16,256], index: 0, kind: input, shape index: {}, may-alias: {0,1}]   ;;  %s1026_s1 = inlined_call_operand.vmem [shape: bf16[2,16,256], index: 1, kind: input, shape index: {}, may-alias: {0,1}]   ;;  %s1027_s2 = inlined_call_operand.vmem [shape: bf16[4,8,16], index: 2, kind: input, shape index: {}]   ;;  %s1028_s3 = inlined_call_operand.vmem [shape: f32[2,8,128], index: 3, kind: output, shape index: {0}]   ;;  %s1029_s4 = inlined_call_operand.vmem [shape: f32[2,8,128], index: 4, kind: output, shape index: {1}]  }
   0x1   :  { %s925_s17 = smov 0   ;;  %s927_s18 = smov 0  }
   0x2   :  { %s929_s19 = smov 0  }
   0x3 LB: > { %s27_s20 = sadd.s32 1, %s885_s18  ;;  %p43_p1 = scmp.ne.s32.totalorder %s877_s16, %s873_s15  ;;  %s889_s19 = sphi %s929_s19, %s15_s19   ;;  %s885_s18 = sphi %s927_s18, %s1034_s18   ;;  %s881_s17 = sphi %s925_s17, %s1033_s17   ;;  %s877_s16 = sphi %s923_s16, %s1032_s16   ;;  %s873_s15 = sphi %s921_s15, %s1031_s15  }
   0x4   : > { %p29_p0 = scmp.ge.s32.totalorder %s27_s20, 2  ;;  %p44_p2 = scmp.eq.s32.totalorder %s889_s19, 0 }
   0x5   : > { %s36_s23 = sadd.s32 1, %s877_s16  ;;  %p741_p5 = scmp.ge.s32.totalorder %s889_s19, 2 }
   0x6   : > { %s1036_s20 = smov (%p29_p0, %s27_s20), 0  ;;  %p952_p3 = por %p44_p2, %p43_p1 }
   0x7   : > { %s31_s22 = ssub.s32 %s885_s18, %s1036_s20  ;;  %179 = sbr.rel (%p741_p5) target bundleno = 22 (0x16), region = 20 }
   0x8   : > { %p34_p4 = scmp.eq.s32.totalorder %s31_s22, 0 }
   0xa   : > { %s960_s24 = scalar_select %p34_p4, %s877_s16, %s36_s23  }
   0xc   : > { %182 = sbr.rel (!%p952_p3) target bundleno = 17 (0x11), region = 24  ;;  %s184_s25 = sand.u32 (%p952_p3), 1, %s877_s16  }
   0xd   : > { %s764_s26 = sshll.u32 (%p952_p3), %s885_s18, 4  ;;  %s742_s27 = sshll.u32 (%p952_p3), %s184_s25, 3 }
   0xe   : > { %s190_s30 = scalar_lea.vmem (%p952_p3), %s1025_s0, %s764_s26  ;;  %s186_s5 = scalar_lea.vmem (%p952_p3), [#allocation2], %s742_s27 }
   0xf   : > { %v207_v0 = vld [vmem:[%s190_s30] sm:$0xf] (%p952_p3)  ;;  %v209_v1 = vld [vmem:[%s190_s30 + $0x8] sm:$0xf] (%p952_p3) }
  0x10   : > { %208 = vst [vmem:[%s186_s5] sm:$0xf] (%p952_p3), %v207_v0  ;;  %210 = vst [vmem:[%s186_s5 + $0x4] sm:$0xf] (%p952_p3), %v209_v1 }
  0x11 PF: > { %238 = sbr.rel (!%p952_p3) target bundleno = 22 (0x16), region = 65  ;;  %s240_s6 = sand.u32 (%p952_p3), 1, %s877_s16  }
  0x12   : > { %s765_s7 = sshll.u32 (%p952_p3), %s885_s18, 4  ;;  %s745_s8 = sshll.u32 (%p952_p3), %s240_s6, 3 }
  0x13   : > { %s653_s11 = scalar_lea.vmem (%p952_p3), %s1026_s1, %s765_s7  ;;  %s242_s12 = scalar_lea.vmem (%p952_p3), [#allocation3], %s745_s8 }
  0x14   : > { %v748_v2 = vld [vmem:[%s653_s11 + $0x4] sm:$0xf] (%p952_p3)  ;;  %v749_v3 = vld [vmem:[%s653_s11 + $0xc] sm:$0xf] (%p952_p3) }
  0x15   : > { %265 = vst [vmem:[%s242_s12] sm:$0xf] (%p952_p3), %v748_v2  ;;  %267 = vst [vmem:[%s242_s12 + $0x4] sm:$0xf] (%p952_p3), %v749_v3 }
  0x16 PF: > { %p750_p6 = scmp.ge.s32.totalorder %s889_s19, 1  ;;  %p294_p7 = scmp.lt.s32.totalorder %s889_s19, 3 }
  0x18   : > { %p295_p8 = pnand %p750_p6, %p294_p7 }
  0x19   : > { %s301_s13 = sand.u32 (!%p295_p8), 1, %s873_s15   ;;  %s893_s23 = smov (!%p295_p8), 119  }
  0x1a   : > { %298 = sbr.rel (%p295_p8) target bundleno = 400 (0x190), region = 106  ;;  %s751_s14 = sshll.u32 (!%p295_p8), %s301_s13, 3 }
  0x1b   : > { %s303_s21 = scalar_lea.vmem (!%p295_p8), [#allocation2], %s751_s14  ;;  %s310_s22 = scalar_lea.vmem (!%p295_p8), [#allocation3], %s751_s14 }
  0x1c   : > { %s894_s25 = smov (!%p295_p8), 127   ;;  %s895_s27 = smov (!%p295_p8), 118  }
  0x1d   : > { %p347_p9 = scmp.lt.s32.totalorder (!%p295_p8), %s881_s17, 1 }
  0x1f   : > { %v891_v4 = vmov 0.0   ;;  %vm892_vm0 = vmmov 0   ;;  %v843_v5 = vld [vmem:[%s303_s21] sm:$0xff]   ;;  %v844_v6 = vld [vmem:[%s310_s22] sm:$0xff]   ;;  %vm388_vm1 = vcmask 130048   ;;  %vm385_vm2 = vcmask 1039360  }
  0x20   : > { %780 = vmatprep.subr.bf16.mxu1 %v891_v4  ;;  %774 = vmatprep.subr.bf16.mxu0 %v891_v4  ;;  %v377_v7 = vld [vmem:[%s1027_s2] sm:$0xf]  ;;  %vm479_vm3 = vcmask 973824   ;;  %v378_v13 = vld [vmem:[%s1027_s2 + $0x4] sm:$0xf]  ;;  %vm530_vm4 = vcmask 965632  }
  0x21   : > { %782 = vmatprep.mubr.msk.bf16.mxu1 %vm892_vm0, %v891_v4  ;;  %776 = vmatprep.mubr.msk.bf16.mxu0 %vm892_vm0, %v891_v4  ;;  %v380_v18 = vld [vmem:[%s1027_s2 + $0xc] sm:$0xf]  ;;  %v379_v19 = vld [vmem:[%s1027_s2 + $0x8] sm:$0xf]  ;;  %s1038_s17 = smov (!%p347_p9, %s881_s17), 1 }
  0x22   : > { %475 = vrot.lane.b32.xlu1 %v843_v5, %s893_s23  ;;  %381 = vrot.lane.b32.xlu0 %v843_v5, %s894_s25  ;;  %s753_s8 = sshll.u32 %s1038_s17, 3 }
  0x23   : > { %781 = vmatpush3.bf16.msra.mxu1 %v843_v5  ;;  %s353_s11 = scalar_lea.vmem %s1028_s3, %s753_s8  ;;  %s360_s14 = scalar_lea.vmem %s1029_s4, %s753_s8 }
  0x24   : > { %792 = vmatprep.subr.bf16.mxu1 %v891_v4 }
  0x26   : > { %477 = vrot.lane.b32.xlu1 %v844_v6, %s893_s23  ;;  %383 = vrot.lane.b32.xlu0 %v844_v6, %s894_s25 }
  0x27   : > { %783 = vmatmul.mubr.msk.bf16.vlgmr.msra.gmra.mxu1 %vm388_vm1, %v377_v7 }
  0x28   : > { %794 = vmatprep.mubr.msk.bf16.mxu1 %vm892_vm0, %v891_v4 }
  0x2a   : > { %528 = vrot.lane.b32.xlu1 %v844_v6, %s895_s27  ;;  %526 = vrot.lane.b32.xlu0 %v843_v5, %s895_s27 }
  0x94   : > { %v476_v8 = vpop.permute.xlu1 %475  ;;  %v382_v9 = vpop.permute.xlu0 %381 }
  0x98   : > { %v478_v10 = vpop.permute.xlu1 %477  ;;  %v384_v11 = vpop.permute.xlu0 %383 }
  0x99   : > { %v386_v12 = vsel %vm385_vm2, %v382_v9, %v384_v11  ;;  %v480_v16 = vsel %vm479_vm3, %v476_v8, %v478_v10 }
  0x9a   : > { %775 = vmatpush3.bf16.msra.mxu0 %v386_v12 }
  0x9b   : > { %786 = vmatprep.subr.bf16.mxu0 %v891_v4 }
  0x9c   : > { %v529_v14 = vpop.permute.xlu1 %528  ;;  %v527_v15 = vpop.permute.xlu0 %526 }
  0x9d   : > { %777 = vmatmul.mubr.msk.bf16.vlgmr.msra.gmra.mxu0 %vm388_vm1, %v378_v13  ;;  %v531_v17 = vsel %vm530_vm4, %v527_v15, %v529_v14 }
  0x9e   : > { %787 = vmatpush3.bf16.msra.mxu0 %v480_v16  ;;  %793 = vmatpush3.bf16.msra.mxu1 %v531_v17 }
  0x9f   : > { %788 = vmatprep.mubr.msk.bf16.mxu0 %vm892_vm0, %v891_v4 }
  0xa1   : > { %795 = vmatmul.mubr.msk.bf16.vlgmr.msra.gmra.mxu1 %vm388_vm1, %v380_v18 }
  0xa5   : > { %789 = vmatmul.mubr.msk.bf16.vlgmr.msra.gmra.mxu0 %vm388_vm1, %v379_v19 }
  0xe7   : > { %v469_v20 = vpop.f32.mrf.mxu1 }
  0xe9   : > { %v784_v21 = vpop.f32.mrf.mxu1 }
  0xeb   : > { %v472_v22 = vpop.f32.mrf.mxu1 }
  0xed   : > { %v785_v23 = vpop.f32.mrf.mxu1 }
 0x15d   : > { %v426_v24 = vpop.f32.mrf.mxu0 }
 0x15e   : > { %v470_v30 = vadd.f32 %v469_v20, %v426_v24 }
 0x15f   : > { %v778_v25 = vpop.f32.mrf.mxu0 }
 0x161   : > { %v429_v26 = vpop.f32.mrf.mxu0  ;;  %v570_v27 = vpop.f32.mrf.mxu1 }
 0x163   : > { %v779_v28 = vpop.f32.mrf.mxu0  ;;  %v796_v29 = vpop.f32.mrf.mxu1 }
 0x165   : > { %v519_v31 = vpop.f32.mrf.mxu0  ;;  %v573_v32 = vpop.f32.mrf.mxu1 }
 0x166   : > { %v525_v33 = vadd.f32 %v519_v31, %v470_v30 }
 0x167   : > { %v790_v34 = vpop.f32.mrf.mxu0  ;;  %v797_v35 = vpop.f32.mrf.mxu1 }
 0x168   : > { %v576_v36 = vadd.f32 %v570_v27, %v525_v33 }
 0x169   : > { %v522_v37 = vpop.f32.mrf.mxu0 }
 0x16a   : > { %v761_v38 = vadd.f32 -1.0, %v576_v36  ;;  %vm588_vm5 = vcmp.gt.f32.partialorder %v576_v36, 0.0  ;;  %vm585_vm6 = vcmp.lt.f32.partialorder %v576_v36, 1.0 }
 0x16b   : > { %v589_v39 = vsel %vm588_vm5, %v576_v36, 1.0  ;;  %v791_v40 = vpop.f32.mrf.mxu0 }
 0x16c   : > { %v578_v41 = vmul.f32 %v761_v38, %v761_v38  ;;  %845 = vlog2.f32 %v589_v39 }
 0x16e   : > { %v579_v42 = vmul.f32 -0.5, %v578_v41 }
 0x170   : > { %v580_v43 = vmul.f32 1.442695, %v579_v42 }
 0x172   : > { %847 = vpow2.f32 %v580_v43 }
 0x179   : > { %v846_v44 = vpop.eup %845 }
 0x17a   : > { %v591_v45 = vmul.f32 0.6931472, %v846_v44 }
 0x17c   : > { %v592_v46 = vmul.f32 0.8, %v591_v45 }
 0x17e   : > { %v593_v47 = vmul.f32 1.442695, %v592_v46 }
 0x17f   : > { %v848_v48 = vpop.eup %847 }
 0x180   : > { %v583_v49 = vmul.f32 0.1, %v848_v48  ;;  %849 = vpow2.f32 %v593_v47  ;;  %v582_v50 = vmul.f32 1.1, %v848_v48 }
 0x182   : > { %v584_v51 = vadd.f32 1.0, %v583_v49 }
 0x184   : > { %v586_v52 = vsel %vm585_vm6, %v582_v50, %v584_v51 }
 0x185   : > { %587 = vst [vmem:[%s353_s11] sm:$0xff] %v586_v52 }
 0x18d   : > { %v850_v53 = vpop.eup %849 }
 0x18e   : > { %v595_v54 = vsel %vm588_vm5, %v850_v53, 0.0 }
 0x18f   : > { %596 = vst [vmem:[%s360_s14] sm:$0xff] %v595_v54 }
 0x190 PF: > { %s15_s19 = sadd.s32 1, %s889_s19   ;;  %s1031_s15 = smov %s877_s16 }
 0x191   : > { %p12_p10 = scmp.ge.s32.totalorder %s15_s19, 4   ;;  %s1032_s16 = smov %s960_s24 }
 0x192   : > { %s1033_s17 = smov %s885_s18  ;;  %s1034_s18 = smov %s1036_s20 }
 0x193   :  { %14 = sbr.rel (!%p12_p10) target bundleno = 3 (0x3), region = 169 }

</bundles_post_ra>
